<compile_context>
chip_gen: v7x
topology: tpu7x:2x2x1
jax: 0.10.0
libtpu: 0.0.40
codegen_flags: <defaults>
</compile_context>

<pallas_src>
import math

import numpy as np
import jax
import jax.numpy as jnp
from jax import lax
from jax.experimental import pallas as pl
from jax.experimental.pallas import tpu as pltpu


# ---------------------------------------------------------------------------
# Kernel 1: row-tiled nn.Linear   y = x @ W^T + b    (W stored [out, in])
# ---------------------------------------------------------------------------
def _linear_kernel(x_ref, w_ref, b_ref, o_ref):
    # x_ref: (TR, F)   w_ref: (D, F)   b_ref: (1, D)   o_ref: (TR, D)
    y = lax.dot_general(
        x_ref[...], w_ref[...],
        dimension_numbers=(((1,), (1,)), ((), ())),   # contract last dims -> no transpose
        preferred_element_type=jnp.float32)
    o_ref[...] = (y + b_ref[...]).astype(o_ref.dtype)


def _linear(x, w, b, *, out_dtype, block_rows=1024):
    """x: [B, R, F], w: [D, F], b: [D] -> [B, R, D] in out_dtype (f32 accumulation)."""
    B, R, F = x.shape
    D = w.shape[0]
    tr = R if R <= block_rows else max(8, (block_rows // 8) * 8)
    grid = (B, pl.cdiv(R, tr))

    flops = 2 * B * R * F * D
    bytes_accessed = (B * R * F * 4 + D * F * 4 + D * 4
                      + B * R * D * np.dtype(out_dtype).itemsize)

    return pl.pallas_call(
        _linear_kernel,
        out_shape=jax.ShapeDtypeStruct((B, R, D), out_dtype),
        grid_spec=pltpu.PrefetchScalarGridSpec(
            num_scalar_prefetch=0,
            grid=grid,
            in_specs=[
                pl.BlockSpec((pl.Squeezed(), tr, F), lambda b, i: (b, i, 0)),
                pl.BlockSpec((D, F), lambda b, i: (0, 0)),   # weights: resident
                pl.BlockSpec((1, D), lambda b, i: (0, 0)),   # bias: resident
            ],
            out_specs=pl.BlockSpec((pl.Squeezed(), tr, D), lambda b, i: (b, i, 0)),
        ),
        compiler_params=pltpu.CompilerParams(
            dimension_semantics=("parallel", "parallel")),
        cost_estimate=pl.CostEstimate(flops=flops, transcendentals=0,
                                      bytes_accessed=bytes_accessed),
    )(x, w, b.reshape(1, D))


# ---------------------------------------------------------------------------
# Kernel 2: scores tile   o = 10 * tanh(Qp @ Kp^T)      (scale already folded into Qp)
# ---------------------------------------------------------------------------
def _scores_kernel(q_ref, k_ref, o_ref):
    # q_ref: (TLq, D)   k_ref: (TLk, D)   o_ref: (TLq, TLk)
    s = lax.dot_general(
        q_ref[...], k_ref[...],
        dimension_numbers=(((1,), (1,)), ((), ())),   # contract feature dim -> no transpose
        preferred_element_type=jnp.float32)
    o_ref[...] = (10.0 * jnp.tanh(s)).astype(o_ref.dtype)


def single_head_attention(query, key, wq, bq, wk, bk, *,
                          block_q=512, block_k=2048,
                          matmul_dtype=jnp.float32,
                          out_dtype=jnp.float32):
    """query: [B, Lq, H], key: [B, Lk, D] -> scores [B, Lq, Lk] (out_dtype).

    matmul_dtype=jnp.bfloat16 feeds the scores MXU bf16 operands (f32 accumulate)
    -- the big compute lever on v6e/v7x.  out_dtype=jnp.bfloat16 halves the output
    writeback (the dominant byte stream on v5e).  Defaults match the fp32 module.
    """
    B, Lq, H = query.shape
    Bk, Lk, D = key.shape
    assert B == Bk and wq.shape == (D, H) and wk.shape == (D, D)

    # Fold 1/sqrt(out_dim) into the tiny Wq/bq constants host-side (free; grid-invariant).
    inv_sqrt_d = 1.0 / math.sqrt(D)
    wq_s = (wq.astype(jnp.float32) * inv_sqrt_d)
    bq_s = (bq.astype(jnp.float32) * inv_sqrt_d)

    # Each projection is O(L*D*D) -- tiny vs the scores matmul -- so compute it exactly
    # once, in its own small Pallas call (no per-Lq-tile K recompute, no bk re-broadcast).
    q_proj = _linear(query.astype(jnp.float32), wq_s, bq_s, out_dtype=matmul_dtype)
    k_proj = _linear(key.astype(jnp.float32), wk.astype(jnp.float32),
                     bk.astype(jnp.float32), out_dtype=matmul_dtype)

    # Capped, lane-dense tiles + cdiv grid (edge blocks masked on writeback), so VMEM
    # stays bounded regardless of Lq/Lk divisibility (v7x only has 64 MiB physical).
    tlq = Lq if Lq <= block_q else max(8, (block_q // 8) * 8)
    tlk = Lk if Lk <= block_k else max(128, (block_k // 128) * 128)
    n_lq = pl.cdiv(Lq, tlq)
    n_lk = pl.cdiv(Lk, tlk)
    grid = (B, n_lq, n_lk)

    in_isz = np.dtype(matmul_dtype).itemsize
    out_isz = np.dtype(out_dtype).itemsize

    # Double-buffered per-step working set; keep an explicit, generous-but-safe VMEM limit.
    footprint = 2 * (tlq * D * in_isz + tlk * D * in_isz + tlq * tlk * out_isz)
    vmem_limit = int(min(56 * 1024 * 1024, max(32 * 1024 * 1024, 2 * footprint)))

    flops = 2 * B * Lq * Lk * D
    transcendentals = B * Lq * Lk
    bytes_accessed = (B * Lq * D * in_isz            # q_proj: read once per Lq tile
                      + B * n_lq * Lk * D * in_isz   # k_proj: re-streamed per Lq tile
                      + B * Lq * Lk * out_isz)       # scores writeback (dominant)

    return pl.pallas_call(
        _scores_kernel,
        out_shape=jax.ShapeDtypeStruct((B, Lq, Lk), out_dtype),
        grid_spec=pltpu.PrefetchScalarGridSpec(
            num_scalar_prefetch=0,
            grid=grid,
            in_specs=[
                # Q tile: constant along the innermost lk axis -> stays resident.
                pl.BlockSpec((pl.Squeezed(), tlq, D), lambda b, i, j: (b, i, 0)),
                # K tile: streamed along the lk axis.
                pl.BlockSpec((pl.Squeezed(), tlk, D), lambda b, i, j: (b, j, 0)),
            ],
            out_specs=pl.BlockSpec((pl.Squeezed(), tlq, tlk),
                                   lambda b, i, j: (b, i, j)),
        ),
        compiler_params=pltpu.CompilerParams(
            # No cross-step carries -> every axis independent; both v7x TensorCores get
            # work even when B * n_lq == 1.
            dimension_semantics=("parallel", "parallel", "parallel"),
            vmem_limit_bytes=vmem_limit,
        ),
        cost_estimate=pl.CostEstimate(flops=flops,
                                      transcendentals=transcendentals,
                                      bytes_accessed=bytes_accessed),
    )(q_proj, k_proj)
    # TODO(synk): optional boolean `mask` (masked_fill with -inf) not wired in; the
    # reference default (mask=None) path is implemented exactly.


# ---------------------------------------------------------------------------
# Pure-JAX references
# ---------------------------------------------------------------------------
def _reference(query, key, wq, bq, wk, bk):
    D = wq.shape[0]
    hp = jax.lax.Precision.HIGHEST
    Q = jnp.einsum("blh,dh->bld", query, wq, precision=hp) + bq
    K = jnp.einsum("bkd,ed->bke", key, wk, precision=hp) + bk
    scores = jnp.einsum("bld,bkd->blk", Q, K, precision=hp) / math.sqrt(D)
    return 10.0 * jnp.tanh(scores)


def _reference_bf16_operands(query, key, wq, bq, wk, bk):
    # Mirrors the matmul_dtype=bf16 kernel path: f32 projections rounded to bf16 before
    # the scores contraction (which accumulates in f32).
    D = wq.shape[0]
    s = 1.0 / math.sqrt(D)
    hp = jax.lax.Precision.HIGHEST
    Q = (jnp.einsum("blh,dh->bld", query, wq * s, precision=hp) + bq * s)
    K = (jnp.einsum("bkd,ed->bke", key, wk, precision=hp) + bk)
    Q = Q.astype(jnp.bfloat16).astype(jnp.float32)
    K = K.astype(jnp.bfloat16).astype(jnp.float32)
    return 10.0 * jnp.tanh(jnp.einsum("bld,bkd->blk", Q, K, precision=hp))


if __name__ == "__main__":
    hidden_dim, out_dim = 32, 16

    k0 = jax.random.PRNGKey(0)
    k_q, k_k, k_wq, k_bq, k_wk, k_bk = jax.random.split(k0, 6)

    # Deterministic nn.Linear-style init (uniform in +/- 1/sqrt(fan_in)).
    bound_q = 1.0 / math.sqrt(hidden_dim)
    bound_k = 1.0 / math.sqrt(out_dim)
    wq = jax.random.uniform(k_wq, (out_dim, hidden_dim), jnp.float32, -bound_q, bound_q)
    bq = jax.random.uniform(k_bq, (out_dim,), jnp.float32, -bound_q, bound_q)
    wk = jax.random.uniform(k_wk, (out_dim, out_dim), jnp.float32, -bound_k, bound_k)
    bk = jax.random.uniform(k_bk, (out_dim,), jnp.float32, -bound_k, bound_k)

    # --- main check: fp32 path, multi-tile (B, Lq, Lk) grid ---------------------------
    B, Lq, Lk = 2, 256, 512
    query = jax.random.normal(k_q, (B, Lq, hidden_dim), dtype=jnp.float32)
    key = jax.random.normal(k_k, (B, Lk, out_dim), dtype=jnp.float32)

    out = single_head_attention(query, key, wq, bq, wk, bk, block_q=128, block_k=256)
    out = jax.block_until_ready(out)
    ref = _reference(query, key, wq, bq, wk, bk)
    assert out.shape == (B, Lq, Lk) and out.dtype == jnp.float32
    assert jnp.allclose(out, ref, atol=1e-4, rtol=1e-4), "fp32 mismatch vs reference"

    # --- edge-block check: shapes that do NOT divide the tiles (cdiv + masked writes) --
    q2 = jax.random.normal(k_q, (1, 200, hidden_dim), dtype=jnp.float32)
    k2 = jax.random.normal(k_k, (1, 384, out_dim), dtype=jnp.float32)
    out2 = jax.block_until_ready(
        single_head_attention(q2, k2, wq, bq, wk, bk, block_q=128, block_k=256))
    assert jnp.allclose(out2, _reference(q2, k2, wq, bq, wk, bk),
                        atol=1e-4, rtol=1e-4), "edge-block mismatch vs reference"

    # --- bf16-operand smoke check (v6e/v7x MXU lever), vs bf16-operand reference -------
    out_bf16 = jax.block_until_ready(
        single_head_attention(query, key, wq, bq, wk, bk, matmul_dtype=jnp.bfloat16))
    ref_bf16 = _reference_bf16_operands(query, key, wq, bq, wk, bk)
    assert jnp.allclose(out_bf16, ref_bf16, atol=2e-2, rtol=0.0), "bf16 path mismatch"

    print("KERNEL_OK")
</pallas_src>

<mosaic_0001>
module attributes {stable_mosaic.version = 11 : i64} {
  func.func @_linear_kernel(%arg0: i32, %arg1: i32, %arg2: memref<1x256x32xf32, #tpu.memory_space<vmem>>, %arg3: memref<16x32xf32, #tpu.memory_space<vmem>>, %arg4: memref<1x16xf32, #tpu.memory_space<vmem>>, %arg5: memref<1x256x16xf32, #tpu.memory_space<vmem>>) attributes {dimension_semantics = [#tpu.dimension_semantics<parallel>, #tpu.dimension_semantics<parallel>], iteration_bounds = array<i64: 2, 1>, scalar_prefetch = 0 : i64, scratch_operands = 0 : i64, tpu.core_type = #tpu.core_type<tc>, window_params = [{transform_indices = @transform_0, window_bounds = array<i64: 1, 256, 32>}, {pipeline_mode = #tpu.pipeline_mode<synchronous>, transform_indices = @transform_1, window_bounds = array<i64: 16, 32>}, {pipeline_mode = #tpu.pipeline_mode<synchronous>, transform_indices = @transform_2, window_bounds = array<i64: 1, 16>}, {transform_indices = @transform_3, window_bounds = array<i64: 1, 256, 16>}]} {
    %c0 = arith.constant 0 : index
    %c0_0 = arith.constant 0 : index
    %c0_1 = arith.constant 0 : index
    %0 = vector.load %arg2[%c0, %c0_0, %c0_1] : memref<1x256x32xf32, #tpu.memory_space<vmem>>, vector<1x256x32xf32>
    %1 = vector.shape_cast %0 : vector<1x256x32xf32> to vector<256x32xf32>
    %c0_2 = arith.constant 0 : index
    %c0_3 = arith.constant 0 : index
    %2 = vector.load %arg3[%c0_2, %c0_3] : memref<16x32xf32, #tpu.memory_space<vmem>>, vector<16x32xf32>
    %cst = arith.constant dense<0.000000e+00> : vector<256x16xf32>
    %3 = tpu.matmul %1, %2, %cst {dimension_numbers = #tpu.dot_dimension_numbers<[1], [1], [0], [0], [0, 0, 1, 0], [], []>} : vector<256x32xf32>, vector<16x32xf32>, vector<256x16xf32> -> vector<256x16xf32>
    %c0_4 = arith.constant 0 : index
    %c0_5 = arith.constant 0 : index
    %4 = vector.load %arg4[%c0_4, %c0_5] : memref<1x16xf32, #tpu.memory_space<vmem>>, vector<1x16xf32>
    %5 = vector.broadcast %4 : vector<1x16xf32> to vector<256x16xf32>
    %6 = arith.addf %3, %5 : vector<256x16xf32>
    %c0_6 = arith.constant 0 : index
    %c0_7 = arith.constant 0 : index
    %c0_8 = arith.constant 0 : index
    %7 = vector.load %arg5[%c0_6, %c0_7, %c0_8] : memref<1x256x16xf32, #tpu.memory_space<vmem>>, vector<1x256x16xf32>
    %8 = vector.shape_cast %7 : vector<1x256x16xf32> to vector<256x16xf32>
    %9 = vector.shape_cast %6 : vector<256x16xf32> to vector<1x256x16xf32>
    tpu.vector_store %arg5[%c0_6, %c0_7, %c0_8], %9 {strides = array<i32>} : memref<1x256x16xf32, #tpu.memory_space<vmem>>, vector<1x256x16xf32>,
    return
  }
  func.func @transform_0(%arg0: i32, %arg1: i32) -> (i32, i32, i32) {
    %c0_i32 = arith.constant 0 : i32
    %c0_i32_0 = arith.constant 0 : i32
    return %arg0, %arg1, %c0_i32 : i32, i32, i32
  }
  func.func @transform_1(%arg0: i32, %arg1: i32) -> (i32, i32) {
    %c0_i32 = arith.constant 0 : i32
    %c0_i32_0 = arith.constant 0 : i32
    %c0_i32_1 = arith.constant 0 : i32
    return %c0_i32, %c0_i32_0 : i32, i32
  }
  func.func @transform_2(%arg0: i32, %arg1: i32) -> (i32, i32) {
    %c0_i32 = arith.constant 0 : i32
    %c0_i32_0 = arith.constant 0 : i32
    %c0_i32_1 = arith.constant 0 : i32
    return %c0_i32, %c0_i32_0 : i32, i32
  }
  func.func @transform_3(%arg0: i32, %arg1: i32) -> (i32, i32, i32) {
    %c0_i32 = arith.constant 0 : i32
    %c0_i32_0 = arith.constant 0 : i32
    return %arg0, %arg1, %c0_i32 : i32, i32, i32
  }
}

</mosaic_0001>

<bundles_post_ra>
// kernel: tpu_custom_call.1
= control target key start
LH: loop header
LB: loop body
LE: loop exit
PB: predicated region body
PF: predicated region fallthrough
CT: control target
= control target key end

     0   :  { %s909_s12 = smov 0   ;;  %s911_s13 = smov 0   ;;  %s1126_s0 = inlined_call_operand.vmem [shape: f32[2,256,32], index: 0, kind: input, shape index: {}]   ;;  %s1127_s1 = inlined_call_operand.vmem [shape: f32[16,32], index: 1, kind: input, shape index: {}]   ;;  %s1128_s2 = inlined_call_operand.vmem [shape: f32[1,16], index: 2, kind: input, shape index: {}]   ;;  %s1129_s3 = inlined_call_operand.vmem [shape: f32[2,256,16], index: 3, kind: output, shape index: {}]  }
   0x1   :  { %s913_s14 = smov 0  }
   0x2 LB: > { %s25_s15 = sadd.s32 1, %s883_s13  ;;  %p703_p0 = scmp.ge.s32.totalorder %s887_s14, 1  ;;  %s887_s14 = sphi %s913_s14, %s13_s14   ;;  %s883_s13 = sphi %s911_s13, %s1131_s13   ;;  %s879_s12 = sphi %s909_s12, %s1130_s12  }
   0x3   : > { %p27_p1 = scmp.ge.s32.totalorder %s25_s15, 2  ;;  %p158_p2 = scmp.lt.s32.totalorder %s887_s14, 3 }
   0x5   : > { %s1133_s15 = smov (%p27_p1, %s25_s15), 0  ;;  %p159_p3 = pnand %p703_p0, %p158_p2 }
   0x6   : > { %v242_v0 = vld [vmem:[%s1127_s1] sm:$0xff] (!%p159_p3)  ;;  %v243_v1 = vld [vmem:[%s1127_s1 + $0x8] sm:$0xff] (!%p159_p3)  ;;  %vm251_vm0 = vcmask (!%p159_p3), 261120   ;;  %p191_p4 = scmp.lt.s32.totalorder (!%p159_p3), %s879_s12, 1  ;;  %vm579_vm2 = vcmask (!%p159_p3), 130048  }
   0x7   : > { %162 = sbr.rel (%p159_p3) target bundleno = 264 (0x108), region = 32  ;;  %v833_v2 = vpack.c.bf16 (!%p159_p3), %v243_v1, %v242_v0  ;;  %vm834_vm1 = vmpackc.low (!%p159_p3), %vm251_vm0, %vm251_vm0  ;;  %v1012_v35 = vld [vmem:[%s1128_s2] ss:$0 sm:$0xff] (!%p159_p3) }
   0x9   : > { %835 = vmatprep.subr.msk.bf16.mxu0 (!%p159_p3), %vm834_vm1, %v833_v2  ;;  %839 = vmatprep.subr.msk.bf16.mxu1 (!%p159_p3), %vm834_vm1, %v833_v2 }
   0xa   : > { %838 = vmatpush3.bf16.xpose.msk.msra.mxu0 (!%p159_p3), %vm834_vm1, %v833_v2  ;;  %840 = vmatpush3.bf16.xpose.msk.msra.mxu1 (!%p159_p3), %vm834_vm1, %v833_v2 }
   0xe   : > { %s1135_s12 = smov (!%p191_p4, %s879_s12), 1 }
   0xf   : > { %s745_s20 = sshll.u32 %s1135_s12, 8 }
  0x10   : > { %s943_s23 = scalar_lea.vmem %s1126_s0, %s745_s20  ;;  %s1019_s28 = scalar_lea.vmem %s1129_s3, %s745_s20 }
  0x11   : > { %v210_v3 = vld [vmem:[%s943_s23] sm:$0xff]  ;;  %v211_v5 = vld [vmem:[%s943_s23 + $0x8] sm:$0xff]  ;;  %v212_v7 = vld [vmem:[%s943_s23 + $0x10] sm:$0xff] }
  0x12   : > { %v226_v4 = vld [vmem:[%s943_s23 + $0x80] sm:$0xff]  ;;  %785 = vmatprep.mubr.msk.f32.mxu0 %vm251_vm0, %v210_v3  ;;  %v227_v6 = vld [vmem:[%s943_s23 + $0x88] sm:$0xff]  ;;  %v228_v8 = vld [vmem:[%s943_s23 + $0x90] sm:$0xff] }
  0x13   : > { %809 = vmatprep.mubr.msk.f32.mxu1 %vm251_vm0, %v226_v4  ;;  %786 = vmatmul.mubr.msk.f32.vlgmr.msra.gmra.mrb[0].mxu0 %vm251_vm0, %v211_v5  ;;  %v213_v9 = vld [vmem:[%s943_s23 + $0x18] sm:$0xff]  ;;  %v214_v11 = vld [vmem:[%s943_s23 + $0x20] sm:$0xff]  ;;  %v215_v13 = vld [vmem:[%s943_s23 + $0x28] sm:$0xff] }
  0x14   : > { %810 = vmatmul.mubr.msk.f32.vlgmr.msra.gmra.mrb[0].mxu1 %vm251_vm0, %v227_v6  ;;  %788 = vmatprep.mubr.msk.f32.mxu0 %vm251_vm0, %v212_v7  ;;  %v229_v10 = vld [vmem:[%s943_s23 + $0x98] sm:$0xff]  ;;  %v230_v12 = vld [vmem:[%s943_s23 + $0xa0] sm:$0xff]  ;;  %v231_v14 = vld [vmem:[%s943_s23 + $0xa8] sm:$0xff] }
  0x15   : > { %812 = vmatprep.mubr.msk.f32.mxu1 %vm251_vm0, %v228_v8  ;;  %v216_v15 = vld [vmem:[%s943_s23 + $0x30] sm:$0xff]  ;;  %v217_v17 = vld [vmem:[%s943_s23 + $0x38] sm:$0xff]  ;;  %v218_v19 = vld [vmem:[%s943_s23 + $0x40] sm:$0xff] }
  0x16   : > { %v232_v16 = vld [vmem:[%s943_s23 + $0xb0] sm:$0xff]  ;;  %v233_v18 = vld [vmem:[%s943_s23 + $0xb8] sm:$0xff]  ;;  %v234_v20 = vld [vmem:[%s943_s23 + $0xc0] sm:$0xff] }
  0x17   : > { %789 = vmatmul.mubr.msk.f32.gmra.mrb[2].mxu0 %vm251_vm0, %v213_v9  ;;  %v219_v21 = vld [vmem:[%s943_s23 + $0x48] sm:$0xff]  ;;  %v220_v23 = vld [vmem:[%s943_s23 + $0x50] sm:$0xff]  ;;  %v221_v25 = vld [vmem:[%s943_s23 + $0x58] sm:$0xff] }
  0x18   : > { %813 = vmatmul.mubr.msk.f32.gmra.mrb[2].mxu1 %vm251_vm0, %v229_v10  ;;  %791 = vmatprep.mubr.msk.f32.mxu0 %vm251_vm0, %v214_v11  ;;  %v235_v22 = vld [vmem:[%s943_s23 + $0xc8] sm:$0xff]  ;;  %v236_v24 = vld [vmem:[%s943_s23 + $0xd0] sm:$0xff]  ;;  %v237_v26 = vld [vmem:[%s943_s23 + $0xd8] sm:$0xff] }
  0x19   : > { %815 = vmatprep.mubr.msk.f32.mxu1 %vm251_vm0, %v230_v12  ;;  %v222_v27 = vld [vmem:[%s943_s23 + $0x60] sm:$0xff]  ;;  %v223_v29 = vld [vmem:[%s943_s23 + $0x68] sm:$0xff]  ;;  %v224_v31 = vld [vmem:[%s943_s23 + $0x70] sm:$0xff] }
  0x1a   : > { %v238_v28 = vld [vmem:[%s943_s23 + $0xe0] sm:$0xff]  ;;  %v239_v30 = vld [vmem:[%s943_s23 + $0xe8] sm:$0xff]  ;;  %v240_v32 = vld [vmem:[%s943_s23 + $0xf0] sm:$0xff] }
  0x1b   : > { %792 = vmatmul.mubr.msk.f32.gmra.mrb[4].mxu0 %vm251_vm0, %v215_v13  ;;  %v225_v33 = vld [vmem:[%s943_s23 + $0x78] sm:$0xff] }
  0x1c   : > { %816 = vmatmul.mubr.msk.f32.gmra.mrb[4].mxu1 %vm251_vm0, %v231_v14  ;;  %794 = vmatprep.mubr.msk.f32.mxu0 %vm251_vm0, %v216_v15  ;;  %v241_v34 = vld [vmem:[%s943_s23 + $0xf8] sm:$0xff] }
  0x1d   : > { %818 = vmatprep.mubr.msk.f32.mxu1 %vm251_vm0, %v232_v16 }
  0x1f   : > { %795 = vmatmul.mubr.msk.f32.gmra.mrb[6].mxu0 %vm251_vm0, %v217_v17 }
  0x20   : > { %819 = vmatmul.mubr.msk.f32.gmra.mrb[6].mxu1 %vm251_vm0, %v233_v18  ;;  %797 = vmatprep.mubr.msk.f32.mxu0 %vm251_vm0, %v218_v19 }
  0x21   : > { %821 = vmatprep.mubr.msk.f32.mxu1 %vm251_vm0, %v234_v20 }
  0x23   : > { %798 = vmatmul.mubr.msk.f32.gmra.mrb[8].mxu0 %vm251_vm0, %v219_v21 }
  0x24   : > { %822 = vmatmul.mubr.msk.f32.gmra.mrb[8].mxu1 %vm251_vm0, %v235_v22  ;;  %800 = vmatprep.mubr.msk.f32.mxu0 %vm251_vm0, %v220_v23 }
  0x25   : > { %824 = vmatprep.mubr.msk.f32.mxu1 %vm251_vm0, %v236_v24 }
  0x27   : > { %801 = vmatmul.mubr.msk.f32.gmra.mrb[10].mxu0 %vm251_vm0, %v221_v25 }
  0x28   : > { %825 = vmatmul.mubr.msk.f32.gmra.mrb[10].mxu1 %vm251_vm0, %v237_v26  ;;  %803 = vmatprep.mubr.msk.f32.mxu0 %vm251_vm0, %v222_v27 }
  0x29   : > { %827 = vmatprep.mubr.msk.f32.mxu1 %vm251_vm0, %v238_v28 }
  0x2b   : > { %804 = vmatmul.mubr.msk.f32.gmra.mrb[12].mxu0 %vm251_vm0, %v223_v29 }
  0x2c   : > { %828 = vmatmul.mubr.msk.f32.gmra.mrb[12].mxu1 %vm251_vm0, %v239_v30  ;;  %806 = vmatprep.mubr.msk.f32.mxu0 %vm251_vm0, %v224_v31 }
  0x2d   : > { %830 = vmatprep.mubr.msk.f32.mxu1 %vm251_vm0, %v240_v32 }
  0x2f   : > { %807 = vmatmul.mubr.msk.f32.gmra.mrb[14].mxu0 %vm251_vm0, %v225_v33 }
  0x30   : > { %831 = vmatmul.mubr.msk.f32.gmra.mrb[14].mxu1 %vm251_vm0, %v241_v34 }
  0xe6   : > { %v787_v36 = vpop.f32.mrb[0].mxu0 }
  0xe7   : > { %v811_v37 = vpop.f32.mrb[0].mxu1  ;;  %v426_v38 = vadd.f32 %v787_v36, %v1012_v35  ;;  %v420_v40 = vpop.f32.mrb[1].mxu0 }
  0xe8   : > { %v506_v39 = vadd.f32 %v811_v37, %v1012_v35  ;;  %v500_v41 = vpop.f32.mrb[1].mxu1  ;;  %v421_v42 = vadd.f32 %v1012_v35, %v420_v40 }
  0xe9   : > { %v501_v43 = vadd.f32 %v1012_v35, %v500_v41  ;;  %581 = vst.msk [vmem:[%s1019_s28 + $0x8] sm:$0xff] %vm579_vm2, %v426_v38 }
  0xea   : > { %597 = vst.msk [vmem:[%s1019_s28 + $0x88] sm:$0xff] %vm579_vm2, %v506_v39  ;;  %580 = vst.msk [vmem:[%s1019_s28] sm:$0xff] %vm579_vm2, %v421_v42  ;;  %v790_v44 = vpop.f32.mrb[2].mxu0 }
  0xeb   : > { %596 = vst.msk [vmem:[%s1019_s28 + $0x80] sm:$0xff] %vm579_vm2, %v501_v43  ;;  %v814_v45 = vpop.f32.mrb[2].mxu1  ;;  %v436_v46 = vadd.f32 %v790_v44, %v1012_v35  ;;  %v430_v48 = vpop.f32.mrb[3].mxu0 }
  0xec   : > { %v516_v47 = vadd.f32 %v814_v45, %v1012_v35  ;;  %v510_v49 = vpop.f32.mrb[3].mxu1  ;;  %v431_v50 = vadd.f32 %v1012_v35, %v430_v48 }
  0xed   : > { %v511_v51 = vadd.f32 %v1012_v35, %v510_v49  ;;  %583 = vst.msk [vmem:[%s1019_s28 + $0x18] sm:$0xff] %vm579_vm2, %v436_v46 }
  0xee   : > { %599 = vst.msk [vmem:[%s1019_s28 + $0x98] sm:$0xff] %vm579_vm2, %v516_v47  ;;  %582 = vst.msk [vmem:[%s1019_s28 + $0x10] sm:$0xff] %vm579_vm2, %v431_v50  ;;  %v793_v52 = vpop.f32.mrb[4].mxu0 }
  0xef   : > { %598 = vst.msk [vmem:[%s1019_s28 + $0x90] sm:$0xff] %vm579_vm2, %v511_v51  ;;  %v817_v53 = vpop.f32.mrb[4].mxu1  ;;  %v446_v54 = vadd.f32 %v793_v52, %v1012_v35  ;;  %v440_v56 = vpop.f32.mrb[5].mxu0 }
  0xf0   : > { %v526_v55 = vadd.f32 %v817_v53, %v1012_v35  ;;  %v520_v57 = vpop.f32.mrb[5].mxu1  ;;  %v441_v58 = vadd.f32 %v1012_v35, %v440_v56 }
  0xf1   : > { %v521_v59 = vadd.f32 %v1012_v35, %v520_v57  ;;  %585 = vst.msk [vmem:[%s1019_s28 + $0x28] sm:$0xff] %vm579_vm2, %v446_v54 }
  0xf2   : > { %601 = vst.msk [vmem:[%s1019_s28 + $0xa8] sm:$0xff] %vm579_vm2, %v526_v55  ;;  %584 = vst.msk [vmem:[%s1019_s28 + $0x20] sm:$0xff] %vm579_vm2, %v441_v58  ;;  %v796_v60 = vpop.f32.mrb[6].mxu0 }
  0xf3   : > { %600 = vst.msk [vmem:[%s1019_s28 + $0xa0] sm:$0xff] %vm579_vm2, %v521_v59  ;;  %v820_v61 = vpop.f32.mrb[6].mxu1  ;;  %v456_v62 = vadd.f32 %v796_v60, %v1012_v35  ;;  %v450_v0 = vpop.f32.mrb[7].mxu0 }
  0xf4   : > { %v536_v63 = vadd.f32 %v820_v61, %v1012_v35  ;;  %v530_v1 = vpop.f32.mrb[7].mxu1  ;;  %v451_v2 = vadd.f32 %v1012_v35, %v450_v0 }
  0xf5   : > { %v531_v3 = vadd.f32 %v1012_v35, %v530_v1  ;;  %587 = vst.msk [vmem:[%s1019_s28 + $0x38] sm:$0xff] %vm579_vm2, %v456_v62 }
  0xf6   : > { %603 = vst.msk [vmem:[%s1019_s28 + $0xb8] sm:$0xff] %vm579_vm2, %v536_v63  ;;  %586 = vst.msk [vmem:[%s1019_s28 + $0x30] sm:$0xff] %vm579_vm2, %v451_v2  ;;  %v799_v4 = vpop.f32.mrb[8].mxu0 }
  0xf7   : > { %602 = vst.msk [vmem:[%s1019_s28 + $0xb0] sm:$0xff] %vm579_vm2, %v531_v3  ;;  %v823_v5 = vpop.f32.mrb[8].mxu1  ;;  %v466_v6 = vadd.f32 %v799_v4, %v1012_v35  ;;  %v460_v8 = vpop.f32.mrb[9].mxu0 }
  0xf8   : > { %v546_v7 = vadd.f32 %v823_v5, %v1012_v35  ;;  %v540_v9 = vpop.f32.mrb[9].mxu1  ;;  %v461_v10 = vadd.f32 %v1012_v35, %v460_v8 }
  0xf9   : > { %v541_v11 = vadd.f32 %v1012_v35, %v540_v9  ;;  %589 = vst.msk [vmem:[%s1019_s28 + $0x48] sm:$0xff] %vm579_vm2, %v466_v6 }
  0xfa   : > { %605 = vst.msk [vmem:[%s1019_s28 + $0xc8] sm:$0xff] %vm579_vm2, %v546_v7  ;;  %588 = vst.msk [vmem:[%s1019_s28 + $0x40] sm:$0xff] %vm579_vm2, %v461_v10  ;;  %v802_v12 = vpop.f32.mrb[10].mxu0 }
  0xfb   : > { %604 = vst.msk [vmem:[%s1019_s28 + $0xc0] sm:$0xff] %vm579_vm2, %v541_v11  ;;  %v826_v13 = vpop.f32.mrb[10].mxu1  ;;  %v476_v14 = vadd.f32 %v802_v12, %v1012_v35  ;;  %v470_v16 = vpop.f32.mrb[11].mxu0 }
  0xfc   : > { %v556_v15 = vadd.f32 %v826_v13, %v1012_v35  ;;  %v550_v17 = vpop.f32.mrb[11].mxu1  ;;  %v471_v18 = vadd.f32 %v1012_v35, %v470_v16 }
  0xfd   : > { %v551_v19 = vadd.f32 %v1012_v35, %v550_v17  ;;  %591 = vst.msk [vmem:[%s1019_s28 + $0x58] sm:$0xff] %vm579_vm2, %v476_v14 }
  0xfe   : > { %607 = vst.msk [vmem:[%s1019_s28 + $0xd8] sm:$0xff] %vm579_vm2, %v556_v15  ;;  %590 = vst.msk [vmem:[%s1019_s28 + $0x50] sm:$0xff] %vm579_vm2, %v471_v18  ;;  %v805_v20 = vpop.f32.mrb[12].mxu0 }
  0xff   : > { %606 = vst.msk [vmem:[%s1019_s28 + $0xd0] sm:$0xff] %vm579_vm2, %v551_v19  ;;  %v829_v21 = vpop.f32.mrb[12].mxu1  ;;  %v486_v22 = vadd.f32 %v805_v20, %v1012_v35  ;;  %v480_v24 = vpop.f32.mrb[13].mxu0 }
 0x100   : > { %v566_v23 = vadd.f32 %v829_v21, %v1012_v35  ;;  %v560_v25 = vpop.f32.mrb[13].mxu1  ;;  %v481_v26 = vadd.f32 %v1012_v35, %v480_v24 }
 0x101   : > { %v561_v27 = vadd.f32 %v1012_v35, %v560_v25  ;;  %593 = vst.msk [vmem:[%s1019_s28 + $0x68] sm:$0xff] %vm579_vm2, %v486_v22 }
 0x102   : > { %609 = vst.msk [vmem:[%s1019_s28 + $0xe8] sm:$0xff] %vm579_vm2, %v566_v23  ;;  %592 = vst.msk [vmem:[%s1019_s28 + $0x60] sm:$0xff] %vm579_vm2, %v481_v26  ;;  %v808_v28 = vpop.f32.mrb[14].mxu0 }
 0x103   : > { %608 = vst.msk [vmem:[%s1019_s28 + $0xe0] sm:$0xff] %vm579_vm2, %v561_v27  ;;  %v832_v29 = vpop.f32.mrb[14].mxu1  ;;  %v496_v30 = vadd.f32 %v808_v28, %v1012_v35  ;;  %v490_v32 = vpop.f32.mrb[15].mxu0 }
 0x104   : > { %v576_v31 = vadd.f32 %v832_v29, %v1012_v35  ;;  %v570_v33 = vpop.f32.mrb[15].mxu1  ;;  %v491_v34 = vadd.f32 %v1012_v35, %v490_v32 }
 0x105   : > { %v571_v36 = vadd.f32 %v1012_v35, %v570_v33  ;;  %595 = vst.msk [vmem:[%s1019_s28 + $0x78] sm:$0xff] %vm579_vm2, %v496_v30 }
 0x106   : > { %611 = vst.msk [vmem:[%s1019_s28 + $0xf8] sm:$0xff] %vm579_vm2, %v576_v31  ;;  %594 = vst.msk [vmem:[%s1019_s28 + $0x70] sm:$0xff] %vm579_vm2, %v491_v34 }
 0x107   : > { %610 = vst.msk [vmem:[%s1019_s28 + $0xf0] sm:$0xff] %vm579_vm2, %v571_v36 }
 0x108 PF: > { %s13_s14 = sadd.s32 1, %s887_s14   ;;  %s1130_s12 = smov %s883_s13 }
 0x109   : > { %p10_p5 = scmp.ge.s32.totalorder %s13_s14, 4   ;;  %s1131_s13 = smov %s1133_s15 }
 0x10b   :  { %12 = sbr.rel (!%p10_p5) target bundleno = 2 (0x2), region = 62 }

</bundles_post_ra>
